<compile_context>
chip_gen: v7x
topology: tpu7x:2x2x1
jax: 0.10.0
libtpu: 0.0.40
codegen_flags: <defaults>
</compile_context>

<pallas_src>
import math
from functools import partial

import jax
import jax.numpy as jnp
from jax import lax
from jax.experimental import pallas as pl
from jax.experimental.pallas import tpu as pltpu


# ---------------------------------------------------------------------------
# Small helpers
# ---------------------------------------------------------------------------
def _round_up(x, m):
    return ((x + m - 1) // m) * m


def _pick_tile(dim, preferred):
    for t in preferred:
        if dim >= t and dim % t == 0:
            return t
    return dim


def _vmem_limit(footprint_bytes):
    # Explicit scoped-VMEM limit: required on v5e (16 MiB scoped default),
    # kept <= 64 MiB so the same value is legal on v7x (64 MiB physical).
    return int(min(64 << 20, max(32 << 20, footprint_bytes + (8 << 20))))


# ---------------------------------------------------------------------------
# Fused QKV projection:  q,k,v = (x@Wq+bq)*scale, x@Wk+bk, x@Wv+bv
# Weights pre-transposed to (in, out) and pre-cast to compute_dtype in the
# wrapper.  Outputs are written in compute_dtype (the attention operand dtype).
# ---------------------------------------------------------------------------
def _qkv_kernel(x_ref, wq_ref, wk_ref, wv_ref, bq_ref, bk_ref, bv_ref,
                q_ref, k_ref, v_ref, acc_q, acc_k, acc_v, *, q_scale):
    @pl.when(pl.program_id(2) == 0)
    def _init():
        acc_q[...] = jnp.zeros_like(acc_q)
        acc_k[...] = jnp.zeros_like(acc_k)
        acc_v[...] = jnp.zeros_like(acc_v)

    x = x_ref[...]                       # loaded once, reused for 3 dots
    acc_q[...] += jnp.dot(x, wq_ref[...], preferred_element_type=jnp.float32)
    acc_k[...] += jnp.dot(x, wk_ref[...], preferred_element_type=jnp.float32)
    acc_v[...] += jnp.dot(x, wv_ref[...], preferred_element_type=jnp.float32)

    @pl.when(pl.program_id(2) == pl.num_programs(2) - 1)
    def _finalize():
        # q is emitted pre-scaled and already in the attention compute dtype,
        # so the attention kernel needs no per-kv-step scale/cast.
        q_ref[...] = ((acc_q[...] + bq_ref[...]) * q_scale).astype(q_ref.dtype)
        k_ref[...] = (acc_k[...] + bk_ref[...]).astype(k_ref.dtype)
        v_ref[...] = (acc_v[...] + bv_ref[...]).astype(v_ref.dtype)


def fused_qkv_proj(x, wq_t, wk_t, wv_t, bq, bk, bv, *, q_scale, out_dtype):
    """x: (M, E) in compute_dtype, w*_t: (E, E) compute_dtype, b*: (E,) f32."""
    M, K = x.shape
    N = wq_t.shape[1]
    tm = _pick_tile(M, (512, 256, 128))
    tn = _pick_tile(N, (256, 128))
    tk = _pick_tile(K, (512, 256, 128))
    grid = (M // tm, N // tn, K // tk)

    x_spec = pl.BlockSpec((tm, tk), lambda i, j, kk: (i, kk))
    w_spec = pl.BlockSpec((tk, tn), lambda i, j, kk: (kk, j))
    b_spec = pl.BlockSpec((1, tn), lambda i, j, kk: (0, j))
    o_spec = pl.BlockSpec((tm, tn), lambda i, j, kk: (i, j))
    out_sd = jax.ShapeDtypeStruct((M, N), out_dtype)

    isz = jnp.dtype(x.dtype).itemsize
    osz = jnp.dtype(out_dtype).itemsize
    footprint = (2 * tm * tk * isz              # x blocks (double-buffered)
                 + 3 * 2 * tk * tn * isz        # wq, wk, wv blocks
                 + 3 * 2 * tn * 4               # biases
                 + 3 * 2 * tm * tn * osz        # q, k, v output blocks
                 + 3 * tm * tn * 4)             # f32 accumulators

    return pl.pallas_call(
        partial(_qkv_kernel, q_scale=q_scale),
        grid=grid,
        in_specs=[x_spec, w_spec, w_spec, w_spec, b_spec, b_spec, b_spec],
        out_specs=(o_spec, o_spec, o_spec),
        out_shape=(out_sd, out_sd, out_sd),
        scratch_shapes=[pltpu.VMEM((tm, tn), jnp.float32) for _ in range(3)],
        compiler_params=pltpu.CompilerParams(
            dimension_semantics=("parallel", "parallel", "arbitrary"),
            vmem_limit_bytes=_vmem_limit(footprint)),
    )(x, wq_t, wk_t, wv_t,
      bq.reshape(1, N), bk.reshape(1, N), bv.reshape(1, N))


# ---------------------------------------------------------------------------
# Tiled linear:  out = x @ W + b   (W pre-transposed & pre-cast in wrapper)
# ---------------------------------------------------------------------------
def _linear_kernel(x_ref, w_ref, b_ref, o_ref, acc_ref):
    @pl.when(pl.program_id(2) == 0)
    def _init():
        acc_ref[...] = jnp.zeros_like(acc_ref)

    acc_ref[...] += jnp.dot(x_ref[...], w_ref[...],
                            preferred_element_type=jnp.float32)

    @pl.when(pl.program_id(2) == pl.num_programs(2) - 1)
    def _finalize():
        o_ref[...] = (acc_ref[...] + b_ref[...]).astype(o_ref.dtype)


def linear(x, w_t, b, *, out_dtype):
    M, K = x.shape
    N = w_t.shape[1]
    tm = _pick_tile(M, (512, 256, 128))
    tn = _pick_tile(N, (256, 128))
    tk = _pick_tile(K, (512, 256, 128))
    grid = (M // tm, N // tn, K // tk)

    isz = jnp.dtype(x.dtype).itemsize
    osz = jnp.dtype(out_dtype).itemsize
    footprint = (2 * tm * tk * isz + 2 * tk * tn * isz + 2 * tn * 4
                 + 2 * tm * tn * osz + tm * tn * 4)

    return pl.pallas_call(
        _linear_kernel,
        grid=grid,
        in_specs=[
            pl.BlockSpec((tm, tk), lambda i, j, kk: (i, kk)),
            pl.BlockSpec((tk, tn), lambda i, j, kk: (kk, j)),
            pl.BlockSpec((1, tn), lambda i, j, kk: (0, j)),
        ],
        out_specs=pl.BlockSpec((tm, tn), lambda i, j, kk: (i, j)),
        out_shape=jax.ShapeDtypeStruct((M, N), out_dtype),
        scratch_shapes=[pltpu.VMEM((tm, tn), jnp.float32)],
        compiler_params=pltpu.CompilerParams(
            dimension_semantics=("parallel", "parallel", "arbitrary"),
            vmem_limit_bytes=_vmem_limit(footprint)),
    )(x, w_t, b.reshape(1, N))


# ---------------------------------------------------------------------------
# Flash-style causal attention over lane-dense (B*T_pad, E) q/k/v.
# Grid: (batch, q_tile, kv_tile), kv innermost.  q arrives pre-scaled and in
# compute_dtype.  Softmax state: m/l (num_heads, tq, 1), acc (num_heads, tq, d)
# -> leading-axis indexed, no per-head lane-masked RMW.
# ---------------------------------------------------------------------------
def _flash_attn_kernel(q_ref, k_ref, v_ref, o_ref, m_sc, l_sc, acc_sc, *,
                       num_heads, head_dim, seq_len, causal, col_mask, tq, tk):
    qi = pl.program_id(1)
    ki = pl.program_id(2)
    nk = pl.num_programs(2)

    @pl.when(ki == 0)
    def _init():
        m_sc[...] = jnp.full_like(m_sc, -jnp.inf)
        l_sc[...] = jnp.zeros_like(l_sc)
        acc_sc[...] = jnp.zeros_like(acc_sc)

    def compute_tile():
        q_all = q_ref[...]            # (tq, E), pre-scaled, compute dtype
        k_all = k_ref[...]            # (tk, E)
        v_all = v_ref[...]            # (tk, E)

        mask = None
        if causal or col_mask:
            rows = qi * tq + lax.broadcasted_iota(jnp.int32, (tq, tk), 0)
            cols = ki * tk + lax.broadcasted_iota(jnp.int32, (tq, tk), 1)
            if causal and col_mask:
                mask = (rows >= cols) & (cols < seq_len)
            elif causal:
                mask = rows >= cols
            else:
                mask = cols < seq_len

        contract = (((1,), (1,)), ((), ()))      # q @ k^T without a transpose
        # TODO(synk): if bundle dumps show spill vld/vst from the per-head
        # (tq, tk) f32 score tiles, sub-tile the kv dim of this loop
        # (tk_inner=128) while keeping the full (tk, E) DMA block.
        for h in range(num_heads):
            sl = slice(h * head_dim, (h + 1) * head_dim)
            s = lax.dot_general(q_all[:, sl], k_all[:, sl], contract,
                                preferred_element_type=jnp.float32)  # (tq, tk)
            if mask is not None:
                s = jnp.where(mask, s, jnp.float32(-1e30))   # f32 score path

            m_prev = m_sc[h]                                   # (tq, 1)
            m_cur = jnp.maximum(m_prev, jnp.max(s, axis=-1, keepdims=True))
            alpha = jnp.exp(m_prev - m_cur)
            p = jnp.exp(s - m_cur)                             # f32
            l_sc[h] = alpha * l_sc[h] + jnp.sum(p, axis=-1, keepdims=True)
            m_sc[h] = m_cur
            acc_sc[h] = alpha * acc_sc[h] + jnp.dot(
                p.astype(v_all.dtype), v_all[:, sl],
                preferred_element_type=jnp.float32)

    if causal:
        # Tiles strictly above the diagonal: compute skipped here, and their
        # DMA is elided because the kv index_map clamps to the previous block.
        pl.when(ki * tk <= qi * tq + (tq - 1))(compute_tile)
    else:
        compute_tile()

    @pl.when(ki == nk - 1)
    def _finalize():
        # One EUP reciprocal over all heads at once.
        inv_l = pl.reciprocal(l_sc[...], approx=True)          # (H, tq, 1)
        o_ref[...] = jnp.concatenate(
            [(acc_sc[h] * inv_l[h]).astype(o_ref.dtype)
             for h in range(num_heads)], axis=-1)              # lane-dense store


def flash_attention(q, k, v, *, batch, seq_len, seq_len_padded, num_heads,
                    causal):
    """q, k, v: (B*T_pad, E) in compute_dtype (q pre-scaled) -> (B*T_pad, E)."""
    BT, E = q.shape
    head_dim = E // num_heads
    T = seq_len_padded

    tq = _pick_tile(T, (512, 256, 128))   # larger tq halves K/V re-streaming
    tk = _pick_tile(T, (256, 128))

    cd = jnp.dtype(q.dtype).itemsize

    def _footprint(tq_, tk_):
        blocks = 2 * tq_ * E * cd                 # q (double-buffered)
        blocks += 2 * 2 * tk_ * E * cd            # k + v
        blocks += 2 * tq_ * E * cd                # out
        acc = num_heads * _round_up(tq_, 8) * _round_up(head_dim, 128) * 4
        stats = 2 * num_heads * _round_up(tq_, 8) * 128 * 4
        return blocks + acc + stats

    # Keep the working set within a budget that fits every generation
    # (v7x has only 64 MiB of physical VMEM).
    budget = 48 << 20
    while _footprint(tq, tk) > budget:
        if tk >= tq and tk > 128 and T % (tk // 2) == 0:
            tk //= 2
        elif tq > 128 and T % (tq // 2) == 0:
            tq //= 2
        elif tk > 128 and T % (tk // 2) == 0:
            tk //= 2
        else:
            break

    nq = T // tq
    nk = T // tk

    q_spec = pl.BlockSpec((tq, E), lambda b, qi, ki: (b * nq + qi, 0))
    o_spec = pl.BlockSpec((tq, E), lambda b, qi, ki: (b * nq + qi, 0))

    if causal:
        def kv_index(b, qi, ki):
            # Clamp fully-masked (above-diagonal) tiles back to the last needed
            # block: block index unchanged from previous step -> DMA elided.
            last = ((qi + 1) * tq - 1) // tk
            return (b * nk + jnp.minimum(ki, last), 0)
    else:
        def kv_index(b, qi, ki):
            return (b * nk + ki, 0)
    kv_spec = pl.BlockSpec((tk, E), kv_index)
    # TODO(synk): on v5e, add pipeline_mode=pl.Buffered(3) to kv_spec if K/V DMA
    # is still exposed after the bf16 + causal-elision changes.

    kernel = partial(_flash_attn_kernel, num_heads=num_heads,
                     head_dim=head_dim, seq_len=seq_len, causal=causal,
                     col_mask=(seq_len_padded != seq_len), tq=tq, tk=tk)

    return pl.pallas_call(
        kernel,
        grid=(batch, nq, nk),
        in_specs=[q_spec, kv_spec, kv_spec],
        out_specs=o_spec,
        out_shape=jax.ShapeDtypeStruct((BT, E), q.dtype),
        scratch_shapes=[
            pltpu.VMEM((num_heads, tq, 1), jnp.float32),         # running max
            pltpu.VMEM((num_heads, tq, 1), jnp.float32),         # running sum
            pltpu.VMEM((num_heads, tq, head_dim), jnp.float32),  # per-head acc
        ],
        compiler_params=pltpu.CompilerParams(
            dimension_semantics=("parallel", "parallel", "arbitrary"),
            vmem_limit_bytes=_vmem_limit(_footprint(tq, tk))),
    )(q, k, v)


# ---------------------------------------------------------------------------
# Module wrapper
# ---------------------------------------------------------------------------
def init_opt_xattention_params(key, embed_dim):
    """nn.Linear-style init; weights stored pre-transposed to (in, out)."""
    bound = 1.0 / math.sqrt(embed_dim)
    names = ["k_proj", "v_proj", "q_proj", "out_proj"]
    params = {}
    keys = jax.random.split(key, 2 * len(names))
    for i, name in enumerate(names):
        params[name] = {
            "wT": jax.random.uniform(keys[2 * i], (embed_dim, embed_dim),
                                     jnp.float32, -bound, bound),
            "b": jax.random.uniform(keys[2 * i + 1], (embed_dim,),
                                    jnp.float32, -bound, bound),
        }
    return params


def opt_xattention_forward(params, hidden_states, num_heads, *,
                           compute_dtype=jnp.bfloat16):
    """hidden_states: (B, T, E). Returns (attn_output, None, past_key_value).

    compute_dtype controls MXU operand (and q/k/v storage) dtype; softmax and
    accumulation stay f32.  bf16 is the right default on v5e/v6e/v7x.
    NOTE: with bf16 compute, the returned past_key_value is bf16.
    """
    B, T, E = hidden_states.shape
    assert E % num_heads == 0
    head_dim = E // num_heads
    scaling = head_dim ** (-0.5)
    in_dtype = hidden_states.dtype

    # Pad the sequence so the token axis is tile/pipeline friendly (128 for
    # long sequences, 8-sublane minimum for short ones).  Padded key columns
    # are masked inside the attention kernel; padded rows are dropped at the
    # end.
    T_pad = _round_up(T, 128) if T >= 128 else _round_up(T, 8)
    if T_pad != T:
        hidden_states = jnp.pad(hidden_states,
                                ((0, 0), (0, T_pad - T), (0, 0)))

    # Pre-cast activations & weights ONCE in the wrapper (no in-kernel casts).
    x2d = hidden_states.reshape(B * T_pad, E).astype(compute_dtype)
    wq = params["q_proj"]["wT"].astype(compute_dtype)
    wk = params["k_proj"]["wT"].astype(compute_dtype)
    wv = params["v_proj"]["wT"].astype(compute_dtype)
    wo = params["out_proj"]["wT"].astype(compute_dtype)

    # Fused q/k/v projection; q pre-scaled; outputs in compute_dtype so the
    # attention kernel streams half the bytes and does zero per-step casts.
    q, k, v = fused_qkv_proj(
        x2d, wq, wk, wv,
        params["q_proj"]["b"], params["k_proj"]["b"], params["v_proj"]["b"],
        q_scale=scaling, out_dtype=compute_dtype)

    # xformers: LowerTriangularMask only when query length > 1.
    causal = T > 1
    attn = flash_attention(q, k, v, batch=B, seq_len=T, seq_len_padded=T_pad,
                           num_heads=num_heads, causal=causal)  # (B*T_pad, E)

    out = linear(attn, wo, params["out_proj"]["b"], out_dtype=in_dtype)
    out = out.reshape(B, T_pad, E)[:, :T]

    # is_decoder=True: return the KV cache in the PyTorch (B, H, T, d) layout
    # (the attention path itself never leaves the lane-dense (B*T, E) layout).
    k_h = k.reshape(B, T_pad, num_heads, head_dim)[:, :T].transpose(0, 2, 1, 3)
    v_h = v.reshape(B, T_pad, num_heads, head_dim)[:, :T].transpose(0, 2, 1, 3)
    past_key_value = (k_h, v_h)

    return out, None, past_key_value


# ---------------------------------------------------------------------------
# Pure-JAX reference (correctness check only)
# ---------------------------------------------------------------------------
def reference_forward(params, x, num_heads):
    B, T, E = x.shape
    d = E // num_heads

    def lin(p, t):
        return t @ p["wT"] + p["b"]

    q = lin(params["q_proj"], x).reshape(B, T, num_heads, d).transpose(0, 2, 1, 3)
    k = lin(params["k_proj"], x).reshape(B, T, num_heads, d).transpose(0, 2, 1, 3)
    v = lin(params["v_proj"], x).reshape(B, T, num_heads, d).transpose(0, 2, 1, 3)
    s = jnp.einsum("bhqd,bhkd->bhqk", q, k) * (d ** -0.5)
    if T > 1:
        mask = jnp.tril(jnp.ones((T, T), bool))
        s = jnp.where(mask, s, -jnp.inf)
    p = jax.nn.softmax(s, axis=-1)
    o = jnp.einsum("bhqk,bhkd->bhqd", p, v).transpose(0, 2, 1, 3).reshape(B, T, E)
    return lin(params["out_proj"], o)


if __name__ == "__main__":
    B, T, E, H = 2, 8, 32, 4   # batch=2, seq=8, embed_dim=32, num_heads=4

    key = jax.random.PRNGKey(0)
    pkey, xkey = jax.random.split(key)
    params = init_opt_xattention_params(pkey, E)
    hidden_states = jax.random.normal(xkey, (B, T, E), jnp.float32)

    ref = reference_forward(params, hidden_states, H)

    # f32 MXU-operand path (tight parity check).
    out, attn_w, past_kv = opt_xattention_forward(params, hidden_states, H,
                                                  compute_dtype=jnp.float32)
    out = jax.block_until_ready(out)
    assert out.shape == (B, T, E)
    assert attn_w is None
    assert past_kv[0].shape == (B, H, T, E // H)
    assert jnp.allclose(out, ref, atol=2e-2, rtol=2e-2), "f32 mismatch vs ref"

    # Default bf16 MXU-operand / f32-accumulate path (production mode).
    out_bf16, _, _ = opt_xattention_forward(params, hidden_states, H)
    out_bf16 = jax.block_until_ready(out_bf16)
    assert jnp.allclose(out_bf16.astype(jnp.float32), ref,
                        atol=1e-1, rtol=1e-1), "bf16 mismatch vs ref"

    # Ragged length: exercises the padded-sequence / masked-column path.
    T2 = 5
    hs2 = hidden_states[:, :T2]
    ref2 = reference_forward(params, hs2, H)
    out2, _, pkv2 = opt_xattention_forward(params, hs2, H,
                                           compute_dtype=jnp.float32)
    out2 = jax.block_until_ready(out2)
    assert out2.shape == (B, T2, E)
    assert pkv2[0].shape == (B, H, T2, E // H)
    assert jnp.allclose(out2, ref2, atol=2e-2, rtol=2e-2), "padded-T mismatch"

    # Single-token decode step (no causal mask), still padded internally.
    hs3 = hidden_states[:, :1]
    ref3 = reference_forward(params, hs3, H)
    out3, _, _ = opt_xattention_forward(params, hs3, H,
                                        compute_dtype=jnp.float32)
    out3 = jax.block_until_ready(out3)
    assert jnp.allclose(out3, ref3, atol=2e-2, rtol=2e-2), "decode mismatch"

    print("KERNEL_OK")
</pallas_src>

<mosaic_0001>
module attributes {stable_mosaic.version = 11 : i64} {
  func.func @_qkv_kernel(%arg0: i32, %arg1: i32, %arg2: i32, %arg3: memref<16x32xf32, #tpu.memory_space<vmem>>, %arg4: memref<32x32xf32, #tpu.memory_space<vmem>>, %arg5: memref<32x32xf32, #tpu.memory_space<vmem>>, %arg6: memref<32x32xf32, #tpu.memory_space<vmem>>, %arg7: memref<1x32xf32, #tpu.memory_space<vmem>>, %arg8: memref<1x32xf32, #tpu.memory_space<vmem>>, %arg9: memref<1x32xf32, #tpu.memory_space<vmem>>, %arg10: memref<16x32xf32, #tpu.memory_space<vmem>>, %arg11: memref<16x32xf32, #tpu.memory_space<vmem>>, %arg12: memref<16x32xf32, #tpu.memory_space<vmem>>, %arg13: memref<16x32xf32, #tpu.memory_space<vmem>>, %arg14: memref<16x32xf32, #tpu.memory_space<vmem>>, %arg15: memref<16x32xf32, #tpu.memory_space<vmem>>) attributes {dimension_semantics = [#tpu.dimension_semantics<parallel>, #tpu.dimension_semantics<parallel>, #tpu.dimension_semantics<arbitrary>], iteration_bounds = array<i64: 1, 1, 1>, scalar_prefetch = 0 : i64, scratch_operands = 3 : i64, tpu.core_type = #tpu.core_type<tc>, window_params = [{transform_indices = @transform_0, window_bounds = array<i64: 16, 32>}, {transform_indices = @transform_1, window_bounds = array<i64: 32, 32>}, {transform_indices = @transform_2, window_bounds = array<i64: 32, 32>}, {transform_indices = @transform_3, window_bounds = array<i64: 32, 32>}, {transform_indices = @transform_4, window_bounds = array<i64: 1, 32>}, {transform_indices = @transform_5, window_bounds = array<i64: 1, 32>}, {transform_indices = @transform_6, window_bounds = array<i64: 1, 32>}, {transform_indices = @transform_7, window_bounds = array<i64: 16, 32>}, {transform_indices = @transform_8, window_bounds = array<i64: 16, 32>}, {transform_indices = @transform_9, window_bounds = array<i64: 16, 32>}]} {
    %c0_i32 = arith.constant 0 : i32
    %0 = arith.cmpi eq, %arg2, %c0_i32 : i32
    %1 = arith.extui %0 : i1 to i32
    %c0_i32_0 = arith.constant 0 : i32
    %2 = arith.cmpi ne, %1, %c0_i32_0 : i32
    scf.if %2 {
      %cst_24 = arith.constant 0.000000e+00 : f32
      %22 = vector.broadcast %cst_24 : f32 to vector<16x32xf32>
      %c0_25 = arith.constant 0 : index
      %c0_26 = arith.constant 0 : index
      %23 = vector.load %arg13[%c0_25, %c0_26] : memref<16x32xf32, #tpu.memory_space<vmem>>, vector<16x32xf32>
      tpu.vector_store %arg13[%c0_25, %c0_26], %22 {strides = array<i32>} : memref<16x32xf32, #tpu.memory_space<vmem>>, vector<16x32xf32>,
      %cst_27 = arith.constant 0.000000e+00 : f32
      %24 = vector.broadcast %cst_27 : f32 to vector<16x32xf32>
      %c0_28 = arith.constant 0 : index
      %c0_29 = arith.constant 0 : index
      %25 = vector.load %arg14[%c0_28, %c0_29] : memref<16x32xf32, #tpu.memory_space<vmem>>, vector<16x32xf32>
      tpu.vector_store %arg14[%c0_28, %c0_29], %24 {strides = array<i32>} : memref<16x32xf32, #tpu.memory_space<vmem>>, vector<16x32xf32>,
      %cst_30 = arith.constant 0.000000e+00 : f32
      %26 = vector.broadcast %cst_30 : f32 to vector<16x32xf32>
      %c0_31 = arith.constant 0 : index
      %c0_32 = arith.constant 0 : index
      %27 = vector.load %arg15[%c0_31, %c0_32] : memref<16x32xf32, #tpu.memory_space<vmem>>, vector<16x32xf32>
      tpu.vector_store %arg15[%c0_31, %c0_32], %26 {strides = array<i32>} : memref<16x32xf32, #tpu.memory_space<vmem>>, vector<16x32xf32>,
    } else {
    }
    %c0 = arith.constant 0 : index
    %c0_1 = arith.constant 0 : index
    %3 = vector.load %arg3[%c0, %c0_1] : memref<16x32xf32, #tpu.memory_space<vmem>>, vector<16x32xf32>
    %c0_2 = arith.constant 0 : index
    %c0_3 = arith.constant 0 : index
    %4 = vector.load %arg13[%c0_2, %c0_3] : memref<16x32xf32, #tpu.memory_space<vmem>>, vector<16x32xf32>
    %c0_4 = arith.constant 0 : index
    %c0_5 = arith.constant 0 : index
    %5 = vector.load %arg4[%c0_4, %c0_5] : memref<32x32xf32, #tpu.memory_space<vmem>>, vector<32x32xf32>
    %cst = arith.constant dense<0.000000e+00> : vector<16x32xf32>
    %6 = tpu.matmul %3, %5, %cst {dimension_numbers = #tpu.dot_dimension_numbers<[1], [0], [0], [1], [0, 0, 1, 1], [], []>} : vector<16x32xf32>, vector<32x32xf32>, vector<16x32xf32> -> vector<16x32xf32>
    %7 = arith.addf %4, %6 : vector<16x32xf32>
    %c0_6 = arith.constant 0 : index
    %c0_7 = arith.constant 0 : index
    %8 = vector.load %arg13[%c0_6, %c0_7] : memref<16x32xf32, #tpu.memory_space<vmem>>, vector<16x32xf32>
    tpu.vector_store %arg13[%c0_6, %c0_7], %7 {strides = array<i32>} : memref<16x32xf32, #tpu.memory_space<vmem>>, vector<16x32xf32>,
    %c0_8 = arith.constant 0 : index
    %c0_9 = arith.constant 0 : index
    %9 = vector.load %arg14[%c0_8, %c0_9] : memref<16x32xf32, #tpu.memory_space<vmem>>, vector<16x32xf32>
    %c0_10 = arith.constant 0 : index
    %c0_11 = arith.constant 0 : index
    %10 = vector.load %arg5[%c0_10, %c0_11] : memref<32x32xf32, #tpu.memory_space<vmem>>, vector<32x32xf32>
    %cst_12 = arith.constant dense<0.000000e+00> : vector<16x32xf32>
    %11 = tpu.matmul %3, %10, %cst_12 {dimension_numbers = #tpu.dot_dimension_numbers<[1], [0], [0], [1], [0, 0, 1, 1], [], []>} : vector<16x32xf32>, vector<32x32xf32>, vector<16x32xf32> -> vector<16x32xf32>
    %12 = arith.addf %9, %11 : vector<16x32xf32>
    %c0_13 = arith.constant 0 : index
    %c0_14 = arith.constant 0 : index
    %13 = vector.load %arg14[%c0_13, %c0_14] : memref<16x32xf32, #tpu.memory_space<vmem>>, vector<16x32xf32>
    tpu.vector_store %arg14[%c0_13, %c0_14], %12 {strides = array<i32>} : memref<16x32xf32, #tpu.memory_space<vmem>>, vector<16x32xf32>,
    %c0_15 = arith.constant 0 : index
    %c0_16 = arith.constant 0 : index
    %14 = vector.load %arg15[%c0_15, %c0_16] : memref<16x32xf32, #tpu.memory_space<vmem>>, vector<16x32xf32>
    %c0_17 = arith.constant 0 : index
    %c0_18 = arith.constant 0 : index
    %15 = vector.load %arg6[%c0_17, %c0_18] : memref<32x32xf32, #tpu.memory_space<vmem>>, vector<32x32xf32>
    %cst_19 = arith.constant dense<0.000000e+00> : vector<16x32xf32>
    %16 = tpu.matmul %3, %15, %cst_19 {dimension_numbers = #tpu.dot_dimension_numbers<[1], [0], [0], [1], [0, 0, 1, 1], [], []>} : vector<16x32xf32>, vector<32x32xf32>, vector<16x32xf32> -> vector<16x32xf32>
    %17 = arith.addf %14, %16 : vector<16x32xf32>
    %c0_20 = arith.constant 0 : index
    %c0_21 = arith.constant 0 : index
    %18 = vector.load %arg15[%c0_20, %c0_21] : memref<16x32xf32, #tpu.memory_space<vmem>>, vector<16x32xf32>
    tpu.vector_store %arg15[%c0_20, %c0_21], %17 {strides = array<i32>} : memref<16x32xf32, #tpu.memory_space<vmem>>, vector<16x32xf32>,
    %c0_i32_22 = arith.constant 0 : i32
    %19 = arith.cmpi eq, %arg2, %c0_i32_22 : i32
    %20 = arith.extui %19 : i1 to i32
    %c0_i32_23 = arith.constant 0 : i32
    %21 = arith.cmpi ne, %20, %c0_i32_23 : i32
    scf.if %21 {
      %c0_24 = arith.constant 0 : index
      %c0_25 = arith.constant 0 : index
      %22 = vector.load %arg13[%c0_24, %c0_25] : memref<16x32xf32, #tpu.memory_space<vmem>>, vector<16x32xf32>
      %c0_26 = arith.constant 0 : index
      %c0_27 = arith.constant 0 : index
      %23 = vector.load %arg7[%c0_26, %c0_27] : memref<1x32xf32, #tpu.memory_space<vmem>>, vector<1x32xf32>
      %24 = vector.broadcast %23 : vector<1x32xf32> to vector<16x32xf32>
      %25 = arith.addf %22, %24 : vector<16x32xf32>
      %cst_28 = arith.constant 0.353553385 : f32
      %26 = vector.broadcast %cst_28 : f32 to vector<16x32xf32>
      %27 = arith.mulf %25, %26 : vector<16x32xf32>
      %c0_29 = arith.constant 0 : index
      %c0_30 = arith.constant 0 : index
      %28 = vector.load %arg10[%c0_29, %c0_30] : memref<16x32xf32, #tpu.memory_space<vmem>>, vector<16x32xf32>
      tpu.vector_store %arg10[%c0_29, %c0_30], %27 {strides = array<i32>} : memref<16x32xf32, #tpu.memory_space<vmem>>, vector<16x32xf32>,
      %c0_31 = arith.constant 0 : index
      %c0_32 = arith.constant 0 : index
      %29 = vector.load %arg14[%c0_31, %c0_32] : memref<16x32xf32, #tpu.memory_space<vmem>>, vector<16x32xf32>
      %c0_33 = arith.constant 0 : index
      %c0_34 = arith.constant 0 : index
      %30 = vector.load %arg8[%c0_33, %c0_34] : memref<1x32xf32, #tpu.memory_space<vmem>>, vector<1x32xf32>
      %31 = vector.broadcast %30 : vector<1x32xf32> to vector<16x32xf32>
      %32 = arith.addf %29, %31 : vector<16x32xf32>
      %c0_35 = arith.constant 0 : index
      %c0_36 = arith.constant 0 : index
      %33 = vector.load %arg11[%c0_35, %c0_36] : memref<16x32xf32, #tpu.memory_space<vmem>>, vector<16x32xf32>
      tpu.vector_store %arg11[%c0_35, %c0_36], %32 {strides = array<i32>} : memref<16x32xf32, #tpu.memory_space<vmem>>, vector<16x32xf32>,
      %c0_37 = arith.constant 0 : index
      %c0_38 = arith.constant 0 : index
      %34 = vector.load %arg15[%c0_37, %c0_38] : memref<16x32xf32, #tpu.memory_space<vmem>>, vector<16x32xf32>
      %c0_39 = arith.constant 0 : index
      %c0_40 = arith.constant 0 : index
      %35 = vector.load %arg9[%c0_39, %c0_40] : memref<1x32xf32, #tpu.memory_space<vmem>>, vector<1x32xf32>
      %36 = vector.broadcast %35 : vector<1x32xf32> to vector<16x32xf32>
      %37 = arith.addf %34, %36 : vector<16x32xf32>
      %c0_41 = arith.constant 0 : index
      %c0_42 = arith.constant 0 : index
      %38 = vector.load %arg12[%c0_41, %c0_42] : memref<16x32xf32, #tpu.memory_space<vmem>>, vector<16x32xf32>
      tpu.vector_store %arg12[%c0_41, %c0_42], %37 {strides = array<i32>} : memref<16x32xf32, #tpu.memory_space<vmem>>, vector<16x32xf32>,
    } else {
    }
    return
  }
  func.func @transform_0(%arg0: i32, %arg1: i32, %arg2: i32) -> (i32, i32) {
    %c0_i32 = arith.constant 0 : i32
    return %arg0, %arg2 : i32, i32
  }
  func.func @transform_1(%arg0: i32, %arg1: i32, %arg2: i32) -> (i32, i32) {
    %c0_i32 = arith.constant 0 : i32
    return %arg2, %arg1 : i32, i32
  }
  func.func @transform_2(%arg0: i32, %arg1: i32, %arg2: i32) -> (i32, i32) {
    %c0_i32 = arith.constant 0 : i32
    return %arg2, %arg1 : i32, i32
  }
  func.func @transform_3(%arg0: i32, %arg1: i32, %arg2: i32) -> (i32, i32) {
    %c0_i32 = arith.constant 0 : i32
    return %arg2, %arg1 : i32, i32
  }
  func.func @transform_4(%arg0: i32, %arg1: i32, %arg2: i32) -> (i32, i32) {
    %c0_i32 = arith.constant 0 : i32
    %c0_i32_0 = arith.constant 0 : i32
    return %c0_i32, %arg1 : i32, i32
  }
  func.func @transform_5(%arg0: i32, %arg1: i32, %arg2: i32) -> (i32, i32) {
    %c0_i32 = arith.constant 0 : i32
    %c0_i32_0 = arith.constant 0 : i32
    return %c0_i32, %arg1 : i32, i32
  }
  func.func @transform_6(%arg0: i32, %arg1: i32, %arg2: i32) -> (i32, i32) {
    %c0_i32 = arith.constant 0 : i32
    %c0_i32_0 = arith.constant 0 : i32
    return %c0_i32, %arg1 : i32, i32
  }
  func.func @transform_7(%arg0: i32, %arg1: i32, %arg2: i32) -> (i32, i32) {
    %c0_i32 = arith.constant 0 : i32
    return %arg0, %arg1 : i32, i32
  }
  func.func @transform_8(%arg0: i32, %arg1: i32, %arg2: i32) -> (i32, i32) {
    %c0_i32 = arith.constant 0 : i32
    return %arg0, %arg1 : i32, i32
  }
  func.func @transform_9(%arg0: i32, %arg1: i32, %arg2: i32) -> (i32, i32) {
    %c0_i32 = arith.constant 0 : i32
    return %arg0, %arg1 : i32, i32
  }
}

</mosaic_0001>

<bundles_post_ra>
// kernel: tpu_custom_call.1
= control target key start
LH: loop header
LB: loop body
LE: loop exit
PB: predicated region body
PF: predicated region fallthrough
CT: control target
= control target key end

     0   :  { %15 = vsyncpa [#allocation6], 0  ;;  %s935_s0 = inlined_call_operand.hbm [shape: f32[16,32], index: 0, kind: input, shape index: {}]   ;;  %s936_s1 = inlined_call_operand.hbm [shape: f32[32,32], index: 1, kind: input, shape index: {}]   ;;  %s937_s2 = inlined_call_operand.hbm [shape: f32[32,32], index: 2, kind: input, shape index: {}]   ;;  %s938_s3 = inlined_call_operand.hbm [shape: f32[32,32], index: 3, kind: input, shape index: {}]   ;;  %s939_s4 = inlined_call_operand.vmem [shape: f32[1,32], index: 4, kind: input, shape index: {}]   ;;  %s940_s5 = inlined_call_operand.vmem [shape: f32[1,32], index: 5, kind: input, shape index: {}]   ;;  %s941_s6 = inlined_call_operand.vmem [shape: f32[1,32], index: 6, kind: input, shape index: {}]   ;;  %s942_s7 = inlined_call_operand.hbm [shape: f32[16,32], index: 7, kind: output, shape index: {0}]   ;;  %s943_s8 = inlined_call_operand.hbm [shape: f32[16,32], index: 8, kind: output, shape index: {1}]   ;;  %s944_s9 = inlined_call_operand.hbm [shape: f32[16,32], index: 9, kind: output, shape index: {2}]  }
   0x1   :  { %16 = vsyncpa [#allocation9], 0 }
   0x2   :  { %17 = vsyncpa [#allocation12], 0 }
   0x3   :  { %18 = vsyncpa [#allocation7], 0 }
   0x4   :  { %19 = vsyncpa [#allocation15], 0  ;;  %s713_s30 = smov [#allocation8]   ;;  %s714_s11 = smov [#allocation5]  }
   0x5   :  { %s37_s10 = sshll.u32 %s713_s30, 4  ;;  %s25_s12 = sshll.u32 %s714_s11, 4  ;;  %s38_s10 = int_to_ptr.vmem [resolvable:$true] %s37_s10  ;;  %s773_s12 = int_to_ptr.vmem [resolvable:$true] %s25_s12 }
   0x6   :  { %s549_s15 = scalar_lea.hbm %s936_s1, 512 }
   0x7   :  { %p550_p0 = scmp.ne.s32.totalorder %s936_s1, %s549_s15  ;;  %p553_p1 = scmp.lt.u32.totalorder %s549_s15, %s936_s1 }
   0x9   :  { %p555_p2 = pnand %p553_p1, %p550_p0 }
   0xb   :  { %558 = shalt.err (!%p555_p2)
}
   0xc   :  { %s559_s20 = scalar_lea.vmem %s38_s10, 512  ;;  %p564_p4 = scmp.lt.s32.totalorder %s38_s10, %s38_s10 }
   0xd   :  { %p560_p3 = scmp.ne.s32.totalorder %s38_s10, %s559_s20  ;;  %p565_p5 = scmp.lt.s32.totalorder %s559_s20, %s559_s20 }
   0xf   :  { %p566_p6 = por %p565_p5, %p564_p4 }
  0x11   :  { %p567_p7 = pnand %p566_p6, %p560_p3 }
  0x13   :  { %570 = shalt.err (!%p567_p7)
}
  0x14   :  { %s715_s21 = smov 128   ;;  %s716_s22 = smov 8  }
  0x15   :  { %43 = dma.hbm_to_vmem [thread:$0]  %s936_s1, 512, %s38_s10, [#allocation9], %s715_s21, %s715_s21, %s716_s22  }
  0x16   :  { %s571_s27 = scalar_lea.hbm %s935_s0, 256 }
  0x17   :  { %p572_p8 = scmp.ne.s32.totalorder %s935_s0, %s571_s27  ;;  %p575_p9 = scmp.lt.u32.totalorder %s571_s27, %s935_s0 }
  0x19   :  { %p577_p10 = pnand %p575_p9, %p572_p8 }
  0x1b   :  { %580 = shalt.err (!%p577_p10)
}
  0x1c   :  { %s581_s13 = scalar_lea.vmem %s773_s12, 256  ;;  %p586_p12 = scmp.lt.s32.totalorder %s773_s12, %s773_s12 }
  0x1d   :  { %p582_p11 = scmp.ne.s32.totalorder %s773_s12, %s581_s13  ;;  %p587_p13 = scmp.lt.s32.totalorder %s581_s13, %s581_s13 }
  0x1f   :  { %p588_p0 = por %p587_p13, %p586_p12 }
  0x21   :  { %p589_p1 = pnand %p588_p0, %p582_p11 }
  0x23   :  { %592 = shalt.err (!%p589_p1)
}
  0x24   :  { %31 = dma.hbm_to_vmem [thread:$0]  %s935_s0, 256, %s773_s12, [#allocation6], %s715_s21, %s715_s21, %s716_s22  }
  0x25   :  { %s717_s14 = smov [#allocation10]   ;;  %s718_s16 = smov [#allocation11]  }
  0x26   :  { %s49_s15 = sshll.u32 %s717_s14, 4  ;;  %s61_s17 = sshll.u32 %s718_s16, 4  ;;  %s50_s15 = int_to_ptr.vmem [resolvable:$true] %s49_s15  ;;  %s810_s17 = int_to_ptr.vmem [resolvable:$true] %s61_s17 }
  0x27   :  { %s593_s20 = scalar_lea.hbm %s937_s2, 512 }
  0x28   :  { %p594_p2 = scmp.ne.s32.totalorder %s937_s2, %s593_s20  ;;  %p597_p3 = scmp.lt.u32.totalorder %s593_s20, %s937_s2 }
  0x2a   :  { %p599_p4 = pnand %p597_p3, %p594_p2 }
  0x2c   :  { %602 = shalt.err (!%p599_p4)
}
  0x2d   :  { %s603_s0 = scalar_lea.vmem %s50_s15, 512  ;;  %p608_p6 = scmp.lt.s32.totalorder %s50_s15, %s50_s15 }
  0x2e   :  { %p604_p5 = scmp.ne.s32.totalorder %s50_s15, %s603_s0  ;;  %p609_p7 = scmp.lt.s32.totalorder %s603_s0, %s603_s0 }
  0x30   :  { %p610_p8 = por %p609_p7, %p608_p6 }
  0x32   :  { %p611_p9 = pnand %p610_p8, %p604_p5 }
  0x34   :  { %614 = shalt.err (!%p611_p9)
}
  0x35   :  { %55 = dma.hbm_to_vmem [thread:$0]  %s937_s2, 512, %s50_s15, [#allocation9], %s715_s21, %s715_s21, %s716_s22  }
  0x36   :  { %s615_s30 = scalar_lea.hbm %s938_s3, 512 }
  0x37   :  { %p616_p10 = scmp.ne.s32.totalorder %s938_s3, %s615_s30  ;;  %p619_p11 = scmp.lt.u32.totalorder %s615_s30, %s938_s3 }
  0x39   :  { %p621_p12 = pnand %p619_p11, %p616_p10 }
  0x3b   :  { %624 = shalt.err (!%p621_p12)
}
  0x3c   :  { %s625_s14 = scalar_lea.vmem %s810_s17, 512  ;;  %p630_p0 = scmp.lt.s32.totalorder %s810_s17, %s810_s17 }
  0x3d   :  { %p626_p13 = scmp.ne.s32.totalorder %s810_s17, %s625_s14  ;;  %p631_p1 = scmp.lt.s32.totalorder %s625_s14, %s625_s14 }
  0x3f   :  { %p632_p2 = por %p631_p1, %p630_p0 }
  0x41   :  { %p633_p3 = pnand %p632_p2, %p626_p13 }
  0x43   :  { %636 = shalt.err (!%p633_p3)
}
  0x44   :  { %67 = dma.hbm_to_vmem [thread:$0]  %s938_s3, 512, %s810_s17, [#allocation12], %s715_s21, %s715_s21, %s716_s22  }
  0x45   :  { %703 = dma.done.wait [#allocation6], 256  }
  0x46   :  { %704 = vsyncadd [#allocation6], 4294967040 }
  0x47   :  { %705 = dma.done.wait [#allocation9], 1024  }
  0x48   :  { %706 = vsyncadd [#allocation9], 4294966272 }
  0x49   :  { %707 = dma.done.wait [#allocation12], 512  }
  0x4a   :  { %708 = vsyncadd [#allocation12], 4294966784  ;;  %vm90_vm0 = vcmask 261120   ;;  %v719_v0 = vmov 0.0   ;;  %v101_v1 = vld [vmem:[#allocation8] sm:$0xff]  ;;  %v102_v2 = vld [vmem:[#allocation8 + $0x8] sm:$0xff] }
  0x4b   :  { %92 = vst.msk [vmem:[#allocation2 + $0x8] sm:$0xff] %vm90_vm0, %v719_v0  ;;  %91 = vst.msk [vmem:[#allocation2] sm:$0xff] %vm90_vm0, %v719_v0  ;;  %v103_v3 = vld [vmem:[#allocation8 + $0x10] sm:$0xff]  ;;  %v515_v4 = vpack.c.bf16 %v102_v2, %v101_v1  ;;  %v104_v5 = vld [vmem:[#allocation8 + $0x18] sm:$0xff]  ;;  %s720_s19 = smov [#allocation14]   ;;  %s721_s23 = smov [#allocation13]  }
  0x4c   :  { %93 = vst.msk [vmem:[#allocation3] sm:$0xff] %vm90_vm0, %v719_v0  ;;  %94 = vst.msk [vmem:[#allocation3 + $0x8] sm:$0xff] %vm90_vm0, %v719_v0  ;;  %v193_v6 = vld [vmem:[#allocation10] sm:$0xff]  ;;  %v194_v7 = vld [vmem:[#allocation10 + $0x8] sm:$0xff]  ;;  %v519_v8 = vpack.c.bf16 %v104_v5, %v103_v3  ;;  %s422_s20 = sshll.u32 %s720_s19, 4  ;;  %s410_s24 = sshll.u32 %s721_s23, 4  ;;  %s423_s20 = int_to_ptr.vmem [resolvable:$true] %s422_s20  ;;  %s872_s24 = int_to_ptr.vmem [resolvable:$true] %s410_s24 }
  0x4d   :  { %95 = vst.msk [vmem:[#allocation4] sm:$0xff] %vm90_vm0, %v719_v0  ;;  %96 = vst.msk [vmem:[#allocation4 + $0x8] sm:$0xff] %vm90_vm0, %v719_v0  ;;  %v523_v9 = vpack.c.bf16 %v194_v7, %v193_v6  ;;  %v97_v10 = vld [vmem:[#allocation5] sm:$0xff]  ;;  %v278_v11 = vld [vmem:[#allocation11] sm:$0xff]  ;;  %516 = vmatprep.subr.bf16.mxu0 %v515_v4  ;;  %s722_s25 = smov [#allocation16]   ;;  %s637_s0 = scalar_lea.vmem %s423_s20, 256 }
  0x4e   :  { %490 = vmatprep.mubr.msk.f32.mxu0 %vm90_vm0, %v97_v10  ;;  %v279_v12 = vld [vmem:[#allocation11 + $0x8] sm:$0xff]  ;;  %v195_v13 = vld [vmem:[#allocation10 + $0x10] sm:$0xff]  ;;  %v196_v14 = vld [vmem:[#allocation10 + $0x18] sm:$0xff]  ;;  %518 = vmatpush3.bf16.msra.mxu0 %v515_v4  ;;  %s879_s26 = sshll.u32 %s722_s25, 4  ;;  %p638_p4 = scmp.ne.s32.totalorder %s423_s20, %s637_s0  ;;  %s435_s26 = int_to_ptr.vmem [resolvable:$true] %s879_s26 }
  0x4f   :  { %524 = vmatprep.subr.bf16.mxu1 %v523_v9  ;;  %v527_v15 = vpack.c.bf16 %v196_v14, %v195_v13  ;;  %520 = vmatprep.subr.bf16.mxu0 %v519_v8  ;;  %v531_v16 = vpack.c.bf16 %v279_v12, %v278_v11  ;;  %v280_v17 = vld [vmem:[#allocation11 + $0x10] sm:$0xff]  ;;  %v281_v18 = vld [vmem:[#allocation11 + $0x18] sm:$0xff]  ;;  %v461_v36 = vld [vmem:[%s939_s4] ss:$0 sm:$0xff]  ;;  %p642_p5 = scmp.lt.s32.totalorder %s423_s20, %s423_s20  ;;  %p643_p6 = scmp.lt.s32.totalorder %s637_s0, %s637_s0 }
  0x50   :  { %526 = vmatpush3.bf16.msra.mxu1 %v523_v9  ;;  %501 = vmatprep.mubr.msk.f32.mxu1 %vm90_vm0, %v97_v10  ;;  %v98_v19 = vld [vmem:[#allocation5 + $0x8] sm:$0xff]  ;;  %v535_v20 = vpack.c.bf16 %v281_v18, %v280_v17  ;;  %v462_v39 = vld [vmem:[%s940_s5] ss:$0 sm:$0xff] }
  0x51   :  { %528 = vmatprep.subr.bf16.mxu1 %v527_v15  ;;  %v463_v51 = vld [vmem:[%s941_s6] ss:$0 sm:$0xff]  ;;  %p644_p7 = por %p643_p6, %p642_p5 }
  0x52   :  { %522 = vmatpush3.bf16.msra.mxu0 %v519_v8  ;;  %v100_v21 = vld [vmem:[#allocation2 + $0x8] sm:$0xff]  ;;  %v99_v22 = vld [vmem:[#allocation2] sm:$0xff] }
  0x53   :  { %532 = vmatprep.subr.bf16.mxu0 %v531_v16  ;;  %v192_v23 = vld [vmem:[#allocation3 + $0x8] sm:$0xff]  ;;  %v191_v25 = vld [vmem:[#allocation3] sm:$0xff]  ;;  %p645_p8 = pnand %p644_p7, %p638_p4 }
  0x54   :  { %530 = vmatpush3.bf16.msra.mxu1 %v527_v15  ;;  %v277_v33 = vld [vmem:[#allocation4 + $0x8] sm:$0xff]  ;;  %v276_v34 = vld [vmem:[#allocation4] sm:$0xff] }
  0x55   :  { %491 = vmatmul.mubr.msk.f32.vlgmr.msra.gmra.mrb[0].mxu0 %vm90_vm0, %v98_v19 }
  0x56   :  { %534 = vmatpush3.bf16.msra.mxu0 %v531_v16  ;;  %512 = vmatprep.mubr.msk.f32.mxu0 %vm90_vm0, %v97_v10 }
  0x57   :  { %502 = vmatmul.mubr.msk.f32.vlgmr.msra.gmra.mrb[0].mxu1 %vm90_vm0, %v98_v19  ;;  %536 = vmatprep.subr.bf16.mxu0 %v535_v20 }
  0x5a   :  { %538 = vmatpush3.bf16.msra.mxu0 %v535_v20 }
  0x5d   :  { %513 = vmatmul.mubr.msk.f32.vlgmr.msra.gmra.mrb[2].mxu0 %vm90_vm0, %v98_v19 }
 0x128   :  { %v492_v24 = vpop.f32.mrb[0].mxu0 }
 0x129   :  { %v188_v26 = vadd.f32 %v492_v24, %v100_v21  ;;  %v178_v27 = vpop.f32.mrb[1].mxu0 }
 0x12a   :  { %v503_v28 = vpop.f32.mrb[0].mxu1  ;;  %v187_v29 = vadd.f32 %v178_v27, %v99_v22 }
 0x12b   :  { %v273_v30 = vadd.f32 %v503_v28, %v192_v23  ;;  %v263_v31 = vpop.f32.mrb[1].mxu1  ;;  %190 = vst.msk [vmem:[#allocation2 + $0x8] sm:$0xff] %vm90_vm0, %v188_v26 }
 0x12c   :  { %v272_v32 = vadd.f32 %v263_v31, %v191_v25  ;;  %189 = vst.msk [vmem:[#allocation2] sm:$0xff] %vm90_vm0, %v187_v29 }
 0x12d   :  { %275 = vst.msk [vmem:[#allocation3 + $0x8] sm:$0xff] %vm90_vm0, %v273_v30 }
 0x12e   :  { %274 = vst.msk [vmem:[#allocation3] sm:$0xff] %vm90_vm0, %v272_v32 }
 0x130   :  { %v514_v35 = vpop.f32.mrb[2].mxu0 }
 0x131   :  { %v358_v37 = vadd.f32 %v514_v35, %v277_v33  ;;  %v348_v38 = vpop.f32.mrb[3].mxu0 }
 0x132   :  { %v357_v40 = vadd.f32 %v348_v38, %v276_v34  ;;  %v365_v41 = vld [vmem:[#allocation2 + $0x8] sm:$0xff] }
 0x133   :  { %360 = vst.msk [vmem:[#allocation4 + $0x8] sm:$0xff] %vm90_vm0, %v358_v37  ;;  %v364_v43 = vld [vmem:[#allocation2] sm:$0xff]  ;;  %v374_v44 = vadd.f32 %v461_v36, %v365_v41 }
 0x134   :  { %v380_v42 = vld [vmem:[#allocation3 + $0x8] sm:$0xff]  ;;  %359 = vst.msk [vmem:[#allocation4] sm:$0xff] %vm90_vm0, %v357_v40  ;;  %v373_v47 = vadd.f32 %v461_v36, %v364_v43 }
 0x135   :  { %v379_v45 = vld [vmem:[#allocation3] sm:$0xff]  ;;  %v389_v46 = vadd.f32 %v462_v39, %v380_v42  ;;  %v376_v49 = vmul.f32 0.35355338, %v374_v44 }
 0x136   :  { %v388_v48 = vadd.f32 %v462_v39, %v379_v45  ;;  %v375_v50 = vmul.f32 0.35355338, %v373_v47 }
 0x137   :  { %391 = vst.msk [vmem:[#allocation14 + $0x8] sm:$0xff] %vm90_vm0, %v389_v46  ;;  %378 = vst.msk [vmem:[#allocation13 + $0x8] sm:$0xff] %vm90_vm0, %v376_v49 }
 0x138   :  { %390 = vst.msk [vmem:[#allocation14] sm:$0xff] %vm90_vm0, %v388_v48 }
 0x139   :  { %648 = shalt.err (!%p645_p8)
}
 0x13a   :  { %s649_s28 = scalar_lea.hbm %s943_s8, 256 }
 0x13b   :  { %p650_p9 = scmp.ne.s32.totalorder %s943_s8, %s649_s28  ;;  %p653_p10 = scmp.lt.u32.totalorder %s649_s28, %s943_s8 }
 0x13d   :  { %p655_p11 = pnand %p653_p10, %p650_p9 }
 0x13f   :  { %658 = shalt.err (!%p655_p11)
}
 0x140   :  { %428 = dma.vmem_to_hbm [thread:$0]  %s423_s20, 256, %s943_s8, [#allocation15], %s715_s21, %s715_s21, %s716_s22   ;;  %377 = vst.msk [vmem:[#allocation13] sm:$0xff] %vm90_vm0, %v375_v50 }
 0x141   :  { %s659_s10 = scalar_lea.vmem %s872_s24, 256  ;;  %p664_p13 = scmp.lt.s32.totalorder %s872_s24, %s872_s24 }
 0x142   :  { %p660_p12 = scmp.ne.s32.totalorder %s872_s24, %s659_s10  ;;  %p665_p0 = scmp.lt.s32.totalorder %s659_s10, %s659_s10 }
 0x144   :  { %p666_p1 = por %p665_p0, %p664_p13 }
 0x146   :  { %p667_p2 = pnand %p666_p1, %p660_p12 }
 0x148   :  { %670 = shalt.err (!%p667_p2)
}
 0x149   :  { %s671_s15 = scalar_lea.hbm %s942_s7, 256 }
 0x14a   :  { %p672_p3 = scmp.ne.s32.totalorder %s942_s7, %s671_s15  ;;  %p675_p4 = scmp.lt.u32.totalorder %s671_s15, %s942_s7 }
 0x14c   :  { %p677_p5 = pnand %p675_p4, %p672_p3 }
 0x14e   :  { %680 = shalt.err (!%p677_p5)
}
 0x14f   :  { %416 = dma.vmem_to_hbm [thread:$0]  %s872_s24, 256, %s942_s7, [#allocation7], %s715_s21, %s715_s21, %s716_s22   ;;  %v393_v52 = vld [vmem:[#allocation4 + $0x8] sm:$0xff]  ;;  %v392_v53 = vld [vmem:[#allocation4] sm:$0xff] }
 0x150   :  { %v402_v54 = vadd.f32 %v463_v51, %v393_v52  ;;  %v401_v55 = vadd.f32 %v463_v51, %v392_v53  ;;  %s681_s20 = scalar_lea.vmem %s435_s26, 256  ;;  %p686_p7 = scmp.lt.s32.totalorder %s435_s26, %s435_s26 }
 0x151   :  { %p682_p6 = scmp.ne.s32.totalorder %s435_s26, %s681_s20  ;;  %p687_p8 = scmp.lt.s32.totalorder %s681_s20, %s681_s20 }
 0x152   :  { %404 = vst.msk [vmem:[#allocation16 + $0x8] sm:$0xff] %vm90_vm0, %v402_v54  ;;  %403 = vst.msk [vmem:[#allocation16] sm:$0xff] %vm90_vm0, %v401_v55 }
 0x153   :  { %p688_p9 = por %p687_p8, %p686_p7 }
 0x155   :  { %p689_p10 = pnand %p688_p9, %p682_p6 }
 0x157   :  { %692 = shalt.err (!%p689_p10)
}
 0x158   :  { %s693_s7 = scalar_lea.hbm %s944_s9, 256 }
 0x159   :  { %p694_p11 = scmp.ne.s32.totalorder %s944_s9, %s693_s7  ;;  %p697_p12 = scmp.lt.u32.totalorder %s693_s7, %s944_s9 }
 0x15b   :  { %p699_p13 = pnand %p697_p12, %p694_p11 }
 0x15d   :  { %702 = shalt.err (!%p699_p13)
}
 0x15e   :  { %440 = dma.vmem_to_hbm [thread:$0]  %s435_s26, 256, %s944_s9, [#allocation15], %s715_s21, %s715_s21, %s716_s22  }
 0x15f   :  { %709 = dma.done.wait [#allocation7], 256  }
 0x160   :  { %710 = vsyncadd [#allocation7], 4294967040 }
 0x161   :  { %711 = dma.done.wait [#allocation15], 512  }
 0x162   :  { %712 = vsyncadd [#allocation15], 4294966784 }
 0x163   :  { %450 = vsyncpa [#allocation6], 1 }
 0x164   :  { %451 = vsyncpa [#allocation9], 1 }
 0x165   :  { %452 = vsyncpa [#allocation12], 1 }
 0x166   :  { %453 = vsyncpa [#allocation7], 1 }
 0x167   :  { %454 = vsyncpa [#allocation15], 1 }

</bundles_post_ra>
